<compile_context>
chip_gen: v5e
topology: v5e:2x2
jax: 0.10.0
libtpu: 0.0.40
codegen_flags: <defaults>
</compile_context>

<pallas_src>
import functools

import jax
import jax.numpy as jnp
import numpy as np
from jax import lax
from jax.experimental import pallas as pl
from jax.experimental.pallas import tpu as pltpu

IGNORE = 255


def _consistency_kernel(parsing_ref, edge_ref, label_ref,   # inputs
                        cnt_ref,                            # output block (1,1,1)
                        best_ref, pidx_ref):                # VMEM scratch (running argmax)
    cc = pl.program_id(1)
    last = pl.num_programs(1) - 1

    c_chunk, H, W = parsing_ref.shape
    Ce = edge_ref.shape[0]

    # ---- running argmax over parsing channel chunks (first-max tie-break) ----
    @pl.when(cc == 0)
    def _():
        best_ref[...] = jnp.full((H, W), -jnp.inf, jnp.float32)
        pidx_ref[...] = jnp.zeros((H, W), jnp.int32)

    best = best_ref[...]
    pidx = pidx_ref[...]
    base = cc * c_chunk
    for c in range(c_chunk):
        v = parsing_ref[c].astype(jnp.float32)
        m = v > best
        pidx = jnp.where(m, base + c, pidx)
        best = jnp.where(m, v, best)

    @pl.when(cc != last)
    def _():
        best_ref[...] = best
        pidx_ref[...] = pidx

    # ---- last chunk: edge generation, dilation, edge argmax, masked count ----
    @pl.when(cc == last)
    def _():
        label = label_ref[...]
        parsing_pre = jnp.where(label == IGNORE, jnp.int32(IGNORE), pidx)

        row = lax.broadcasted_iota(jnp.int32, (H, W), 0)
        col = lax.broadcasted_iota(jnp.int32, (H, W), 1)

        def shift2d(x, di, dj):
            # y[i, j] = x[(i + di) % H, (j + dj) % W]  (caller masks the wrap-around)
            y = x
            if di:
                y = pltpu.roll(y, (-di) % H, axis=0)
            if dj:
                y = pltpu.roll(y, (-dj) % W, axis=1)
            return y

        pp_valid = parsing_pre != IGNORE
        e = jnp.zeros((H, W), jnp.int32)
        # neighbour offsets of generate_edge_tensor ("right","up","upright","bottomright")
        for di, dj in ((-1, 0), (0, 1), (1, 1), (1, -1)):
            v = shift2d(parsing_pre, di, dj)
            hit = pp_valid & (v != IGNORE) & (parsing_pre != v)
            if di == -1:
                hit = hit & (row >= 1)
            elif di == 1:
                hit = hit & (row <= H - 2)
            if dj == -1:
                hit = hit & (col >= 1)
            elif dj == 1:
                hit = hit & (col <= W - 2)
            e = e | hit.astype(jnp.int32)

        # 3x3 ones conv (pad=1) + binarise == separable boolean dilation
        eh = e
        eh = eh | jnp.where(col >= 1, shift2d(e, 0, -1), 0)
        eh = eh | jnp.where(col <= W - 2, shift2d(e, 0, 1), 0)
        gen = eh
        gen = gen | jnp.where(row >= 1, shift2d(eh, -1, 0), 0)
        gen = gen | jnp.where(row <= H - 2, shift2d(eh, 1, 0), 0)

        # argmax(edge, channel) == 1, computed directly (first-max tie-break)
        if Ce >= 2:
            e1 = edge_ref[1].astype(jnp.float32)
            is1 = e1 > edge_ref[0].astype(jnp.float32)
            for c in range(2, Ce):
                is1 = is1 & (e1 >= edge_ref[c].astype(jnp.float32))
        else:
            is1 = jnp.zeros((H, W), jnp.bool_)

        positive = (label != IGNORE) & (gen > 0) & is1
        cnt = jnp.sum(positive.astype(jnp.float32))
        cnt_ref[...] = jnp.zeros_like(cnt_ref) + cnt


def _positive_counts(parsing, edge, label, c_chunk):
    """Per-image count of {label != 255} & {generated_edge == 1} & {argmax(edge) == 1}."""
    N, C, H, W = parsing.shape
    Ce = edge.shape[1]
    label = label.astype(jnp.int32)
    c_chunk = max(1, min(int(c_chunk), C))

    # Spatial padding to (8, 128) multiples.  Padded pixels carry label=IGNORE, so
    # they generate no edges and never enter the count (semantics preserved exactly).
    Hp = ((H + 7) // 8) * 8
    Wp = ((W + 127) // 128) * 128
    if (Hp, Wp) != (H, W):
        sp = ((0, 0), (0, 0), (0, Hp - H), (0, Wp - W))
        parsing = jnp.pad(parsing, sp)
        edge = jnp.pad(edge, sp)
        label = jnp.pad(label, ((0, 0), (0, Hp - H), (0, Wp - W)),
                        constant_values=IGNORE)

    # Channel padding with -inf (never wins the argmax) so chunks tile C evenly.
    Cp = ((C + c_chunk - 1) // c_chunk) * c_chunk
    if Cp != C:
        parsing = jnp.pad(parsing, ((0, 0), (0, Cp - C), (0, 0), (0, 0)),
                          constant_values=-jnp.inf)
    kc = Cp // c_chunk

    plane = Hp * Wp
    block_bytes = (c_chunk * plane * jnp.dtype(parsing.dtype).itemsize
                   + Ce * plane * jnp.dtype(edge.dtype).itemsize
                   + plane * 4)
    # double-buffered input blocks + argmax scratch + slack, clamped for v7x safety
    vmem_limit = int(min(max(2 * block_bytes + 2 * plane * 4 + (2 << 20), 32 << 20),
                         48 << 20))

    grid_spec = pltpu.PrefetchScalarGridSpec(
        num_scalar_prefetch=0,
        grid=(N, kc),                                # batch parallel, channel chunks arbitrary
        in_specs=[
            pl.BlockSpec((None, c_chunk, Hp, Wp), lambda n, cc: (n, cc, 0, 0)),
            pl.BlockSpec((None, Ce, Hp, Wp), lambda n, cc: (n, 0, 0, 0)),
            pl.BlockSpec((None, Hp, Wp), lambda n, cc: (n, 0, 0)),
        ],
        out_specs=pl.BlockSpec((1, 1, 1), lambda n, cc: (n, 0, 0)),
        scratch_shapes=[
            pltpu.VMEM((Hp, Wp), jnp.float32),       # running max value
            pltpu.VMEM((Hp, Wp), jnp.int32),         # running argmax index
        ],
    )

    counts = pl.pallas_call(
        _consistency_kernel,
        out_shape=jax.ShapeDtypeStruct((N, 1, 1), jnp.float32),
        grid_spec=grid_spec,
        compiler_params=pltpu.CompilerParams(
            dimension_semantics=("parallel", "arbitrary"),
            vmem_limit_bytes=vmem_limit),
    )(parsing, edge, label)
    return counts[:, 0, 0]


@functools.partial(jax.jit, static_argnames=("c_chunk",))
def consistency_loss(parsing, edge, label, c_chunk=8):
    """parsing: (N,C,H,W), edge: (N,Ce,H,W), label: (N,H,W) int.  Matches ConsistencyLoss."""
    total = jnp.sum(_positive_counts(parsing, edge, label, c_chunk))
    # smooth_l1(gen[pos], edge_pre[pos]) is identically 0 on the positive set;
    # the mean over an empty selection is NaN -> 0/total reproduces both cases.
    return jnp.zeros((), jnp.float32) / total


@functools.partial(jax.jit, static_argnames=("c_chunk",))
def consistency_loss_with_counts(parsing, edge, label, c_chunk=8):
    counts = _positive_counts(parsing, edge, label, c_chunk)
    total = jnp.sum(counts)
    return jnp.zeros((), jnp.float32) / total, counts


def _reference(parsing, edge, label):
    """Pure-JAX reference of the PyTorch module (loss + per-image positive counts)."""
    N, _, H, W = parsing.shape
    pp = jnp.argmax(parsing, axis=1).astype(jnp.int32)
    pp = jnp.where(label == IGNORE, jnp.int32(IGNORE), pp)
    lp = jnp.pad(pp, ((0, 0), (1, 1), (1, 1)), constant_values=IGNORE)
    e = jnp.zeros((N, H, W), bool)
    for (di, dj) in ((-1, 0), (0, 1), (1, 1), (1, -1)):
        v = lax.dynamic_slice(lp, (0, 1 + di, 1 + dj), (N, H, W))
        e = e | ((pp != v) & (pp != IGNORE) & (v != IGNORE))
    ep = jnp.pad(e.astype(jnp.float32), ((0, 0), (1, 1), (1, 1)))
    acc = sum(ep[:, di:di + H, dj:dj + W] for di in range(3) for dj in range(3))
    gen = (acc > 0).astype(jnp.float32)
    edge_pre = jnp.argmax(edge, axis=1).astype(jnp.float32)
    valid = label != IGNORE
    pos = valid & (gen == 1.0) & (edge_pre == 1.0)
    d = jnp.abs(gen - edge_pre)
    per = jnp.where(d < 1.0, 0.5 * d * d, d - 0.5)
    loss = jnp.sum(jnp.where(pos, per, 0.0)) / jnp.sum(pos.astype(jnp.float32))
    counts = jnp.sum(pos.astype(jnp.float32), axis=(1, 2))
    return loss, counts


if __name__ == "__main__":
    key = jax.random.PRNGKey(0)
    kp, ke, kl, km = jax.random.split(key, 4)

    N, C, Ce, H, W = 2, 4, 2, 16, 16
    parsing = jax.random.normal(kp, (N, C, H, W), jnp.float32)
    edge = jax.random.normal(ke, (N, Ce, H, W), jnp.float32)
    label = jax.random.randint(kl, (N, H, W), 0, C).astype(jnp.int32)
    ignore_mask = jax.random.uniform(km, (N, H, W)) < 0.1
    label = jnp.where(ignore_mask, jnp.int32(IGNORE), label)

    # c_chunk=2 exercises the channel-streaming (multi grid-step) path.
    loss, counts = consistency_loss_with_counts(parsing, edge, label, c_chunk=2)
    jax.block_until_ready((loss, counts))

    ref_loss, ref_counts = _reference(parsing, edge, label)
    assert np.allclose(np.asarray(counts), np.asarray(ref_counts)), (counts, ref_counts)
    assert np.allclose(np.asarray(loss), np.asarray(ref_loss),
                       atol=1e-6, equal_nan=True), (loss, ref_loss)
    print("KERNEL_OK")
</pallas_src>

<mosaic_0001>
module attributes {stable_mosaic.version = 11 : i64} {
  func.func @_consistency_kernel(%arg0: i32, %arg1: i32, %arg2: memref<1x2x16x128xf32, #tpu.memory_space<vmem>>, %arg3: memref<1x2x16x128xf32, #tpu.memory_space<vmem>>, %arg4: memref<1x16x128xi32, #tpu.memory_space<vmem>>, %arg5: memref<1x1x1xf32, #tpu.memory_space<vmem>>, %arg6: memref<16x128xf32, #tpu.memory_space<vmem>>, %arg7: memref<16x128xi32, #tpu.memory_space<vmem>>) attributes {dimension_semantics = [#tpu.dimension_semantics<parallel>, #tpu.dimension_semantics<arbitrary>], iteration_bounds = array<i64: 2, 2>, scalar_prefetch = 0 : i64, scratch_operands = 2 : i64, tpu.core_type = #tpu.core_type<tc>, window_params = [{transform_indices = @transform_0, window_bounds = array<i64: 1, 2, 16, 128>}, {transform_indices = @transform_1, window_bounds = array<i64: 1, 2, 16, 128>}, {transform_indices = @transform_2, window_bounds = array<i64: 1, 16, 128>}, {transform_indices = @transform_3, window_bounds = array<i64: 1, 1, 1>}]} {
    %c0_i32 = arith.constant 0 : i32
    %0 = arith.cmpi eq, %arg1, %c0_i32 : i32
    %1 = arith.extui %0 : i1 to i32
    %c0_i32_0 = arith.constant 0 : i32
    %2 = arith.cmpi ne, %1, %c0_i32_0 : i32
    scf.if %2 {
      %cst = arith.constant 0xFF800000 : f32
      %26 = vector.broadcast %cst : f32 to vector<16x128xf32>
      %c0_16 = arith.constant 0 : index
      %c0_17 = arith.constant 0 : index
      %27 = vector.load %arg6[%c0_16, %c0_17] : memref<16x128xf32, #tpu.memory_space<vmem>>, vector<16x128xf32>
      tpu.vector_store %arg6[%c0_16, %c0_17], %26 {strides = array<i32>} : memref<16x128xf32, #tpu.memory_space<vmem>>, vector<16x128xf32>,
      %c0_i32_18 = arith.constant 0 : i32
      %28 = vector.broadcast %c0_i32_18 : i32 to vector<16x128xi32>
      %c0_19 = arith.constant 0 : index
      %c0_20 = arith.constant 0 : index
      %29 = vector.load %arg7[%c0_19, %c0_20] : memref<16x128xi32, #tpu.memory_space<vmem>>, vector<16x128xi32>
      tpu.vector_store %arg7[%c0_19, %c0_20], %28 {strides = array<i32>} : memref<16x128xi32, #tpu.memory_space<vmem>>, vector<16x128xi32>,
    } else {
    }
    %c0 = arith.constant 0 : index
    %c0_1 = arith.constant 0 : index
    %3 = vector.load %arg6[%c0, %c0_1] : memref<16x128xf32, #tpu.memory_space<vmem>>, vector<16x128xf32>
    %c0_2 = arith.constant 0 : index
    %c0_3 = arith.constant 0 : index
    %4 = vector.load %arg7[%c0_2, %c0_3] : memref<16x128xi32, #tpu.memory_space<vmem>>, vector<16x128xi32>
    %c2_i32 = arith.constant 2 : i32
    %5 = arith.muli %arg1, %c2_i32 : i32
    %c0_4 = arith.constant 0 : index
    %c0_5 = arith.constant 0 : index
    %c0_6 = arith.constant 0 : index
    %c0_7 = arith.constant 0 : index
    %6 = vector.load %arg2[%c0_4, %c0_5, %c0_6, %c0_7] : memref<1x2x16x128xf32, #tpu.memory_space<vmem>>, vector<1x1x16x128xf32>
    %7 = vector.shape_cast %6 : vector<1x1x16x128xf32> to vector<16x128xf32>
    %8 = arith.cmpf ogt, %7, %3 : vector<16x128xf32>
    %c0_i32_8 = arith.constant 0 : i32
    %9 = arith.addi %5, %c0_i32_8 : i32
    %10 = vector.broadcast %9 : i32 to vector<16x128xi32>
    %11 = arith.select %8, %10, %4 : vector<16x128xi1>, vector<16x128xi32>
    %12 = arith.select %8, %7, %3 : vector<16x128xi1>, vector<16x128xf32>
    %c0_9 = arith.constant 0 : index
    %c1 = arith.constant 1 : index
    %c0_10 = arith.constant 0 : index
    %c0_11 = arith.constant 0 : index
    %13 = vector.load %arg2[%c0_9, %c1, %c0_10, %c0_11] : memref<1x2x16x128xf32, #tpu.memory_space<vmem>>, vector<1x1x16x128xf32>
    %14 = vector.shape_cast %13 : vector<1x1x16x128xf32> to vector<16x128xf32>
    %15 = arith.cmpf ogt, %14, %12 : vector<16x128xf32>
    %c1_i32 = arith.constant 1 : i32
    %16 = arith.addi %5, %c1_i32 : i32
    %17 = vector.broadcast %16 : i32 to vector<16x128xi32>
    %18 = arith.select %15, %17, %11 : vector<16x128xi1>, vector<16x128xi32>
    %19 = arith.select %15, %14, %12 : vector<16x128xi1>, vector<16x128xf32>
    %c1_i32_12 = arith.constant 1 : i32
    %20 = arith.cmpi ne, %arg1, %c1_i32_12 : i32
    %21 = arith.extui %20 : i1 to i32
    %c0_i32_13 = arith.constant 0 : i32
    %22 = arith.cmpi ne, %21, %c0_i32_13 : i32
    scf.if %22 {
      %c0_16 = arith.constant 0 : index
      %c0_17 = arith.constant 0 : index
      %26 = vector.load %arg6[%c0_16, %c0_17] : memref<16x128xf32, #tpu.memory_space<vmem>>, vector<16x128xf32>
      tpu.vector_store %arg6[%c0_16, %c0_17], %19 {strides = array<i32>} : memref<16x128xf32, #tpu.memory_space<vmem>>, vector<16x128xf32>,
      %c0_18 = arith.constant 0 : index
      %c0_19 = arith.constant 0 : index
      %27 = vector.load %arg7[%c0_18, %c0_19] : memref<16x128xi32, #tpu.memory_space<vmem>>, vector<16x128xi32>
      tpu.vector_store %arg7[%c0_18, %c0_19], %18 {strides = array<i32>} : memref<16x128xi32, #tpu.memory_space<vmem>>, vector<16x128xi32>,
    } else {
    }
    %c1_i32_14 = arith.constant 1 : i32
    %23 = arith.cmpi eq, %arg1, %c1_i32_14 : i32
    %24 = arith.extui %23 : i1 to i32
    %c0_i32_15 = arith.constant 0 : i32
    %25 = arith.cmpi ne, %24, %c0_i32_15 : i32
    scf.if %25 {
      %c0_16 = arith.constant 0 : index
      %c0_17 = arith.constant 0 : index
      %c0_18 = arith.constant 0 : index
      %26 = vector.load %arg4[%c0_16, %c0_17, %c0_18] : memref<1x16x128xi32, #tpu.memory_space<vmem>>, vector<1x16x128xi32>
      %27 = vector.shape_cast %26 : vector<1x16x128xi32> to vector<16x128xi32>
      %c255_i32 = arith.constant 255 : i32
      %28 = vector.broadcast %c255_i32 : i32 to vector<16x128xi32>
      %29 = arith.cmpi eq, %27, %28 : vector<16x128xi32>
      %c255_i32_19 = arith.constant 255 : i32
      %30 = vector.broadcast %c255_i32_19 : i32 to vector<16x128xi32>
      %31 = arith.select %29, %30, %18 : vector<16x128xi1>, vector<16x128xi32>
      %32 = tpu.iota {dimensions = array<i32: 0>} : vector<16x128xi32>
      %33 = tpu.iota {dimensions = array<i32: 1>} : vector<16x128xi32>
      %c255_i32_20 = arith.constant 255 : i32
      %34 = vector.broadcast %c255_i32_20 : i32 to vector<16x128xi32>
      %35 = arith.cmpi ne, %31, %34 : vector<16x128xi32>
      %c0_i32_21 = arith.constant 0 : i32
      %36 = vector.broadcast %c0_i32_21 : i32 to vector<16x128xi32>
      %c1_i32_22 = arith.constant 1 : i32
      %37 = tpu.dynamic_rotate %31 by %c1_i32_22 dim 0 : vector<16x128xi32>, i32 -> vector<16x128xi32>
      %c255_i32_23 = arith.constant 255 : i32
      %38 = vector.broadcast %c255_i32_23 : i32 to vector<16x128xi32>
      %39 = arith.cmpi ne, %37, %38 : vector<16x128xi32>
      %40 = arith.andi %35, %39 : vector<16x128xi1>
      %41 = arith.cmpi ne, %31, %37 : vector<16x128xi32>
      %42 = arith.andi %40, %41 : vector<16x128xi1>
      %c1_i32_24 = arith.constant 1 : i32
      %43 = vector.broadcast %c1_i32_24 : i32 to vector<16x128xi32>
      %44 = arith.cmpi sge, %32, %43 : vector<16x128xi32>
      %45 = arith.andi %42, %44 : vector<16x128xi1>
      %46 = arith.extui %45 : vector<16x128xi1> to vector<16x128xi32>
      %47 = arith.ori %36, %46 : vector<16x128xi32>
      %c127_i32 = arith.constant 127 : i32
      %48 = tpu.dynamic_rotate %31 by %c127_i32 dim 1 : vector<16x128xi32>, i32 -> vector<16x128xi32>
      %c255_i32_25 = arith.constant 255 : i32
      %49 = vector.broadcast %c255_i32_25 : i32 to vector<16x128xi32>
      %50 = arith.cmpi ne, %48, %49 : vector<16x128xi32>
      %51 = arith.andi %35, %50 : vector<16x128xi1>
      %52 = arith.cmpi ne, %31, %48 : vector<16x128xi32>
      %53 = arith.andi %51, %52 : vector<16x128xi1>
      %c126_i32 = arith.constant 126 : i32
      %54 = vector.broadcast %c126_i32 : i32 to vector<16x128xi32>
      %55 = arith.cmpi sle, %33, %54 : vector<16x128xi32>
      %56 = arith.andi %53, %55 : vector<16x128xi1>
      %57 = arith.extui %56 : vector<16x128xi1> to vector<16x128xi32>
      %58 = arith.ori %47, %57 : vector<16x128xi32>
      %c15_i32 = arith.constant 15 : i32
      %59 = tpu.dynamic_rotate %31 by %c15_i32 dim 0 : vector<16x128xi32>, i32 -> vector<16x128xi32>
      %c127_i32_26 = arith.constant 127 : i32
      %60 = tpu.dynamic_rotate %59 by %c127_i32_26 dim 1 : vector<16x128xi32>, i32 -> vector<16x128xi32>
      %c255_i32_27 = arith.constant 255 : i32
      %61 = vector.broadcast %c255_i32_27 : i32 to vector<16x128xi32>
      %62 = arith.cmpi ne, %60, %61 : vector<16x128xi32>
      %63 = arith.andi %35, %62 : vector<16x128xi1>
      %64 = arith.cmpi ne, %31, %60 : vector<16x128xi32>
      %65 = arith.andi %63, %64 : vector<16x128xi1>
      %c14_i32 = arith.constant 14 : i32
      %66 = vector.broadcast %c14_i32 : i32 to vector<16x128xi32>
      %67 = arith.cmpi sle, %32, %66 : vector<16x128xi32>
      %68 = arith.andi %65, %67 : vector<16x128xi1>
      %c126_i32_28 = arith.constant 126 : i32
      %69 = vector.broadcast %c126_i32_28 : i32 to vector<16x128xi32>
      %70 = arith.cmpi sle, %33, %69 : vector<16x128xi32>
      %71 = arith.andi %68, %70 : vector<16x128xi1>
      %72 = arith.extui %71 : vector<16x128xi1> to vector<16x128xi32>
      %73 = arith.ori %58, %72 : vector<16x128xi32>
      %c15_i32_29 = arith.constant 15 : i32
      %74 = tpu.dynamic_rotate %31 by %c15_i32_29 dim 0 : vector<16x128xi32>, i32 -> vector<16x128xi32>
      %c1_i32_30 = arith.constant 1 : i32
      %75 = tpu.dynamic_rotate %74 by %c1_i32_30 dim 1 : vector<16x128xi32>, i32 -> vector<16x128xi32>
      %c255_i32_31 = arith.constant 255 : i32
      %76 = vector.broadcast %c255_i32_31 : i32 to vector<16x128xi32>
      %77 = arith.cmpi ne, %75, %76 : vector<16x128xi32>
      %78 = arith.andi %35, %77 : vector<16x128xi1>
      %79 = arith.cmpi ne, %31, %75 : vector<16x128xi32>
      %80 = arith.andi %78, %79 : vector<16x128xi1>
      %c14_i32_32 = arith.constant 14 : i32
      %81 = vector.broadcast %c14_i32_32 : i32 to vector<16x128xi32>
      %82 = arith.cmpi sle, %32, %81 : vector<16x128xi32>
      %83 = arith.andi %80, %82 : vector<16x128xi1>
      %c1_i32_33 = arith.constant 1 : i32
      %84 = vector.broadcast %c1_i32_33 : i32 to vector<16x128xi32>
      %85 = arith.cmpi sge, %33, %84 : vector<16x128xi32>
      %86 = arith.andi %83, %85 : vector<16x128xi1>
      %87 = arith.extui %86 : vector<16x128xi1> to vector<16x128xi32>
      %88 = arith.ori %73, %87 : vector<16x128xi32>
      %c1_i32_34 = arith.constant 1 : i32
      %89 = vector.broadcast %c1_i32_34 : i32 to vector<16x128xi32>
      %90 = arith.cmpi sge, %33, %89 : vector<16x128xi32>
      %c1_i32_35 = arith.constant 1 : i32
      %91 = tpu.dynamic_rotate %88 by %c1_i32_35 dim 1 : vector<16x128xi32>, i32 -> vector<16x128xi32>
      %c0_i32_36 = arith.constant 0 : i32
      %92 = vector.broadcast %c0_i32_36 : i32 to vector<16x128xi32>
      %93 = arith.select %90, %91, %92 : vector<16x128xi1>, vector<16x128xi32>
      %94 = arith.ori %88, %93 : vector<16x128xi32>
      %c126_i32_37 = arith.constant 126 : i32
      %95 = vector.broadcast %c126_i32_37 : i32 to vector<16x128xi32>
      %96 = arith.cmpi sle, %33, %95 : vector<16x128xi32>
      %c127_i32_38 = arith.constant 127 : i32
      %97 = tpu.dynamic_rotate %88 by %c127_i32_38 dim 1 : vector<16x128xi32>, i32 -> vector<16x128xi32>
      %c0_i32_39 = arith.constant 0 : i32
      %98 = vector.broadcast %c0_i32_39 : i32 to vector<16x128xi32>
      %99 = arith.select %96, %97, %98 : vector<16x128xi1>, vector<16x128xi32>
      %100 = arith.ori %94, %99 : vector<16x128xi32>
      %c1_i32_40 = arith.constant 1 : i32
      %101 = vector.broadcast %c1_i32_40 : i32 to vector<16x128xi32>
      %102 = arith.cmpi sge, %32, %101 : vector<16x128xi32>
      %c1_i32_41 = arith.constant 1 : i32
      %103 = tpu.dynamic_rotate %100 by %c1_i32_41 dim 0 : vector<16x128xi32>, i32 -> vector<16x128xi32>
      %c0_i32_42 = arith.constant 0 : i32
      %104 = vector.broadcast %c0_i32_42 : i32 to vector<16x128xi32>
      %105 = arith.select %102, %103, %104 : vector<16x128xi1>, vector<16x128xi32>
      %106 = arith.ori %100, %105 : vector<16x128xi32>
      %c14_i32_43 = arith.constant 14 : i32
      %107 = vector.broadcast %c14_i32_43 : i32 to vector<16x128xi32>
      %108 = arith.cmpi sle, %32, %107 : vector<16x128xi32>
      %c15_i32_44 = arith.constant 15 : i32
      %109 = tpu.dynamic_rotate %100 by %c15_i32_44 dim 0 : vector<16x128xi32>, i32 -> vector<16x128xi32>
      %c0_i32_45 = arith.constant 0 : i32
      %110 = vector.broadcast %c0_i32_45 : i32 to vector<16x128xi32>
      %111 = arith.select %108, %109, %110 : vector<16x128xi1>, vector<16x128xi32>
      %112 = arith.ori %106, %111 : vector<16x128xi32>
      %c0_46 = arith.constant 0 : index
      %c1_47 = arith.constant 1 : index
      %c0_48 = arith.constant 0 : index
      %c0_49 = arith.constant 0 : index
      %113 = vector.load %arg3[%c0_46, %c1_47, %c0_48, %c0_49] : memref<1x2x16x128xf32, #tpu.memory_space<vmem>>, vector<1x1x16x128xf32>
      %114 = vector.shape_cast %113 : vector<1x1x16x128xf32> to vector<16x128xf32>
      %c0_50 = arith.constant 0 : index
      %c0_51 = arith.constant 0 : index
      %c0_52 = arith.constant 0 : index
      %c0_53 = arith.constant 0 : index
      %115 = vector.load %arg3[%c0_50, %c0_51, %c0_52, %c0_53] : memref<1x2x16x128xf32, #tpu.memory_space<vmem>>, vector<1x1x16x128xf32>
      %116 = vector.shape_cast %115 : vector<1x1x16x128xf32> to vector<16x128xf32>
      %117 = arith.cmpf ogt, %114, %116 : vector<16x128xf32>
      %c255_i32_54 = arith.constant 255 : i32
      %118 = vector.broadcast %c255_i32_54 : i32 to vector<16x128xi32>
      %119 = arith.cmpi ne, %27, %118 : vector<16x128xi32>
      %c0_i32_55 = arith.constant 0 : i32
      %120 = vector.broadcast %c0_i32_55 : i32 to vector<16x128xi32>
      %121 = arith.cmpi sgt, %112, %120 : vector<16x128xi32>
      %122 = arith.andi %119, %121 : vector<16x128xi1>
      %123 = arith.andi %122, %117 : vector<16x128xi1>
      %124 = arith.extui %123 : vector<16x128xi1> to vector<16x128xi32>
      %125 = arith.sitofp %124 : vector<16x128xi32> to vector<16x128xf32>
      %126 = vector.shape_cast %125 : vector<16x128xf32> to vector<1x16x128xf32>
      %cst = arith.constant dense<0.000000e+00> : vector<1xf32>
      %127 = vector.multi_reduction <add>, %126, %cst [1, 2] : vector<1x16x128xf32> to vector<1xf32>
      %128 = vector.shape_cast %127 : vector<1xf32> to vector<1x1x1xf32>
      %129 = vector.extract %128[0, 0, 0] : f32 from vector<1x1x1xf32>
      %cst_56 = arith.constant 0.000000e+00 : f32
      %130 = vector.broadcast %cst_56 : f32 to vector<1x1x1xf32>
      %131 = vector.broadcast %129 : f32 to vector<1x1x1xf32>
      %132 = arith.addf %130, %131 : vector<1x1x1xf32>
      %c0_57 = arith.constant 0 : index
      %c0_58 = arith.constant 0 : index
      %c0_59 = arith.constant 0 : index
      %133 = vector.load %arg5[%c0_57, %c0_58, %c0_59] : memref<1x1x1xf32, #tpu.memory_space<vmem>>, vector<1x1x1xf32>
      tpu.vector_store %arg5[%c0_57, %c0_58, %c0_59], %132 {strides = array<i32>} : memref<1x1x1xf32, #tpu.memory_space<vmem>>, vector<1x1x1xf32>,
    } else {
    }
    return
  }
  func.func @transform_0(%arg0: i32, %arg1: i32) -> (i32, i32, i32, i32) {
    %c0_i32 = arith.constant 0 : i32
    %c0_i32_0 = arith.constant 0 : i32
    %c0_i32_1 = arith.constant 0 : i32
    return %arg0, %arg1, %c0_i32, %c0_i32_0 : i32, i32, i32, i32
  }
  func.func @transform_1(%arg0: i32, %arg1: i32) -> (i32, i32, i32, i32) {
    %c0_i32 = arith.constant 0 : i32
    %c0_i32_0 = arith.constant 0 : i32
    %c0_i32_1 = arith.constant 0 : i32
    %c0_i32_2 = arith.constant 0 : i32
    return %arg0, %c0_i32, %c0_i32_0, %c0_i32_1 : i32, i32, i32, i32
  }
  func.func @transform_2(%arg0: i32, %arg1: i32) -> (i32, i32, i32) {
    %c0_i32 = arith.constant 0 : i32
    %c0_i32_0 = arith.constant 0 : i32
    %c0_i32_1 = arith.constant 0 : i32
    return %arg0, %c0_i32, %c0_i32_0 : i32, i32, i32
  }
  func.func @transform_3(%arg0: i32, %arg1: i32) -> (i32, i32, i32) {
    %c0_i32 = arith.constant 0 : i32
    %c0_i32_0 = arith.constant 0 : i32
    %c0_i32_1 = arith.constant 0 : i32
    return %arg0, %c0_i32, %c0_i32_0 : i32, i32, i32
  }
}

</mosaic_0001>

<bundles_post_ra>
// kernel: consistency_loss_with_counts.1
= control target key start
LH: loop header
LB: loop body
LE: loop exit
PB: predicated region body
PF: predicated region fallthrough
CT: control target
= control target key end

     0   :  { %s673_s12 = smov 0   ;;  %s675_s13 = smov 0   ;;  %s910_s0 = inlined_call_operand.vmem [shape: f32[2,4,16,128], index: 0, kind: input, shape index: {}]   ;;  %s911_s1 = inlined_call_operand.vmem [shape: f32[2,2,16,128], index: 1, kind: input, shape index: {}]   ;;  %s912_s2 = inlined_call_operand.vmem [shape: s32[2,16,128], index: 2, kind: input, shape index: {}]   ;;  %s913_s3 = inlined_call_operand.vmem [shape: f32[2,1,1], index: 3, kind: output, shape index: {}]  }
   0x1   :  { %s677_s14 = smov 0   ;;  %s679_s15 = smov 0  }
   0x2   :  { %s681_s16 = smov 0  }
   0x3 LB: > { %s22_s17 = sadd.s32 1, %s637_s14  ;;  %s25_s18 = sadd.s32 1, %s641_s15  ;;  %s645_s16 = sphi %s681_s16, %s13_s16   ;;  %s641_s15 = sphi %s679_s15, %s955_s15   ;;  %s637_s14 = sphi %s677_s14, %s954_s14   ;;  %s633_s13 = sphi %s675_s13, %s953_s13   ;;  %s629_s12 = sphi %s673_s12, %s952_s12  }
   0x4   : > { %p23_p0 = scmp.ge.s32.totalorder %s22_s17, 2  ;;  %p536_p1 = scmp.ge.s32.totalorder %s645_s16, 1 }
   0x5   : > { %p177_p2 = scmp.lt.s32.totalorder %s645_s16, 5 }
   0x6   : > { %s957_s17 = smov (%p23_p0, %s22_s17), 0  ;;  %s959_s18 = smov (!%p23_p0, %s25_s18), %s641_s15 }
   0x7   : > { %p178_p3 = pnand %p536_p1, %p177_p2  ;;  %p27_p4 = scmp.ge.s32.totalorder %s959_s18, 2 }
   0x8   : > { %s706_s19 = sshll.u32 (!%p178_p3), %s629_s12, 1  ;;  %p215_p5 = scmp.lt.s32.totalorder (!%p178_p3), %s633_s13, 1 }
   0x9   : > { %s961_s18 = smov (%p27_p4, %s959_s18), 0  ;;  %181 = sbr.rel (%p178_p3) target bundleno = 514 (0x202), region = 32 }
   0xa   : > { %p217_p6 = scmp.lt.s32.totalorder (!%p178_p3), %s706_s19, 3  ;;  %p545_p7 = scmp.ne.s32.totalorder (!%p178_p3), %s629_s12, 0 }
   0xe   : > { %s963_s13 = smov (!%p215_p5, %s633_s13), 1 }
   0xf   : > { %s218_s20 = scalar_select %p217_p6, %s706_s19, 3 }
  0x10   : > { %s539_s21 = sshll.u32 %s963_s13, 3  ;;  %s557_s22 = sshll.u32 %s963_s13, 5 }
  0x11   : > { %s538_s23 = sshll.u32 %s218_s20, 1  ;;  %s717_s26 = scalar_lea.vmem %s911_s1, %s557_s22 }
  0x12   : > { %s221_s27 = sadd.s32 %s539_s21, %s538_s23  ;;  %s558_s28 = sshll.u32 %s963_s13, 4 }
  0x13   : > { %s540_s29 = sshll.u32 %s221_s27, 3  ;;  %s723_s5 = scalar_lea.vmem %s912_s2, %s558_s28 }
  0x14   : > { %s223_s8 = scalar_lea.vmem %s910_s0, %s540_s29  ;;  %s237_s11 = scalar_lea.vmem %s913_s3, %s963_s13 }
  0x15   : > { %241 = sbr.rel (%p545_p7) target bundleno = 31 (0x1f), region = 36 }
  0x1a   : > { %v647_v0 = vmov -inf   ;;  %v648_v1 = vmov 0  }
  0x1b   : > { %242 = vst [vmem:[#allocation2] sm:$0xff] %v647_v0 }
  0x1c   : > { %243 = vst [vmem:[#allocation2 + $0x8] sm:$0xff] %v647_v0 }
  0x1d   : > { %244 = vst [vmem:[#allocation3 + $0x8] sm:$0xff] %v648_v1 }
  0x1e   : > { %245 = vst [vmem:[#allocation3] sm:$0xff] %v648_v1 }
  0x1f PF: > { %v255_v5 = vstv %s706_s19  ;;  %s265_s20 = sadd.s32 1, %s706_s19  ;;  %v251_v7 = vld [vmem:[%s223_s8] sm:$0xff]  ;;  %v252_v8 = vld [vmem:[%s223_s8 + $0x8] sm:$0xff]  ;;  %v547_v9 = vld [vmem:[%s223_s8 + $0x10] sm:$0xff]  ;;  %p549_p8 = scmp.eq.s32.totalorder %s629_s12, 1 }
  0x20   : > { %v548_v10 = vld [vmem:[%s223_s8 + $0x18] sm:$0xff]  ;;  %v266_v11 = vstv %s265_s20 }
  0x22   : > { %v246_v2 = vld [vmem:[#allocation2] sm:$0xff] }
  0x23   : > { %v247_v3 = vld [vmem:[#allocation2 + $0x8] sm:$0xff]  ;;  %vm253_vm0 = vcmp.gt.f32.partialorder %v251_v7, %v246_v2  ;;  %274 = sbr.rel (%p549_p8) target bundleno = 44 (0x2c), region = 40 }
  0x24   : > { %v248_v4 = vld [vmem:[#allocation3 + $0x8] sm:$0xff]  ;;  %vm254_vm1 = vcmp.gt.f32.partialorder %v252_v8, %v247_v3  ;;  %v258_v14 = vsel %vm253_vm0, %v251_v7, %v246_v2 }
  0x25   : > { %v249_v6 = vld [vmem:[#allocation3] sm:$0xff]  ;;  %v256_v12 = vsel %vm253_vm0, %v255_v5, %v248_v4  ;;  %v259_v15 = vsel %vm254_vm1, %v252_v8, %v247_v3  ;;  %vm263_vm2 = vcmp.gt.f32.partialorder %v547_v9, %v258_v14 }
  0x26   : > { %v257_v13 = vsel %vm254_vm1, %v255_v5, %v249_v6  ;;  %vm264_vm3 = vcmp.gt.f32.partialorder %v548_v10, %v259_v15  ;;  %v267_v16 = vsel %vm263_vm2, %v266_v11, %v256_v12  ;;  %v269_v18 = vsel %vm263_vm2, %v547_v9, %v258_v14 }
  0x27   : > { %v268_v17 = vsel %vm264_vm3, %v266_v11, %v257_v13  ;;  %v270_v19 = vsel %vm264_vm3, %v548_v10, %v259_v15 }
  0x28   : > { %275 = vst [vmem:[#allocation2] sm:$0xff] %v269_v18 }
  0x29   : > { %276 = vst [vmem:[#allocation2 + $0x8] sm:$0xff] %v270_v19 }
  0x2a   : > { %277 = vst [vmem:[#allocation3 + $0x8] sm:$0xff] %v267_v16 }
  0x2b   : > { %278 = vst [vmem:[#allocation3] sm:$0xff] %v268_v17 }
  0x2c PF: > { %p550_p9 = scmp.ne.s32.totalorder %s629_s12, 1 }
  0x2d   : > { %s649_s19 = smov (!%p550_p9), 127   ;;  %s650_s12 = smov (!%p550_p9), 1  }
  0x2e   : > { %282 = sbr.rel (%p550_p9) target bundleno = 514 (0x202), region = 44 }
  0x33   : > { %v738_v20 = vld [vmem:[%s723_s5] sm:$0xff]  ;;  %v741_v21 = vld [vmem:[%s723_s5 + $0x8] sm:$0xff]  ;;  %v289_v22 = vlaneseq  ;;  %v924_v41 = vmov 0  ;;  %v926_v42 = vmov 0  ;;  %v928_v44 = vmov 0  ;;  %v551_v12 = vld [vmem:[%s717_s26 + $0x10] sm:$0xff] }
  0x34   : > { %vm285_vm4 = vcmp.eq.s32.totalorder %v738_v20, 255  ;;  %vm286_vm5 = vcmp.eq.s32.totalorder %v741_v21, 255  ;;  %v931_v46 = vmov 0  ;;  %v933_v47 = vmov 0  ;;  %v411_v13 = vld [vmem:[%s717_s26] sm:$0xff] }
  0x35   : > { %v745_v23 = vsel %vm285_vm4, 255, %v267_v16  ;;  %v747_v24 = vsel %vm286_vm5, 255, %v268_v17  ;;  %v749_v25 = vshrl.u32 %v289_v22, 7  ;;  %v293_v38 = vand.u32 127, %v289_v22  ;;  %v552_v16 = vld [vmem:[%s717_s26 + $0x18] sm:$0xff]  ;;  %v412_v17 = vld [vmem:[%s717_s26 + $0x8] sm:$0xff] }
  0x36   : > { %313 = vrot.lane.b32.xlu0 %v745_v23, %s649_s19  ;;  %v330_v26 = vrot.slane %v745_v23, 1  ;;  %v331_v27 = vrot.slane %v747_v24, 1  ;;  %v296_v31 = vrot.slane %v745_v23, 7  ;;  %v297_v32 = vrot.slane %v747_v24, 7 }
  0x37   : > { %vm914_vm6 = vcmp.lt.s32.totalorder %v749_v25, 7  ;;  %vm915_vm7 = vcmp.lt.s32.totalorder %v749_v25, 1  ;;  %vm295_vm8 = vcmp.ne.s32.totalorder %v747_v24, 255  ;;  %vm918_vm10 = vcmp.ne.s32.totalorder %v745_v23, 255 }
  0x38   : > { %v334_v28 = vsel %vm914_vm6, %v331_v27, %v330_v26  ;;  %v333_v29 = vsel %vm914_vm6, %v330_v26, %v331_v27  ;;  %v300_v33 = vsel %vm915_vm7, %v297_v32, %v296_v31  ;;  %v299_v34 = vsel %vm915_vm7, %v296_v31, %v297_v32 }
  0x39   : > { %337 = vrot.lane.b32.xlu1 %v334_v28, %s649_s19  ;;  %357 = vrot.lane.b32.xlu2 %v334_v28, %s650_s12  ;;  %vm301_vm11 = vcmp.ne.s32.totalorder %v300_v33, 255  ;;  %v776_v35 = vadd.s32 8, %v749_v25  ;;  %vm302_vm14 = vcmp.ne.s32.totalorder %v299_v34, 255  ;;  %vm305_vm0 = vcmp.ne.s32.totalorder %v745_v23, %v300_v33 }
  0x3a   : > { %vm303_vm15 = vmand %vm918_vm10, %vm301_vm11  ;;  %v936_v48 = vmov 0  ;;  %v651_v50 = vmov 0   ;;  %v652_v19 = vmov 0.0  }
  0x3b   : > { %vm916_vm2 = vcmp.le.s32.totalorder %v776_v35, 14  ;;  %vm787_vm4 = vmand %vm295_vm8, %vm302_vm14 }
  0x3c   : > { %vm307_vm5 = vmand %vm303_vm15, %vm305_vm0 }
  0x3e   : > { %315 = vrot.lane.b32.xlu0 %v747_v24, %s649_s19 }
  0x41   : > { %335 = vrot.lane.b32.xlu1 %v333_v29, %s649_s19  ;;  %355 = vrot.lane.b32.xlu2 %v333_v29, %s650_s12 }
  0x93   : > { %v358_v30 = vpop.permute.xlu2 %357 }
  0x94   : > { %vm360_vm9 = vcmp.ne.s32.totalorder %v358_v30, 255  ;;  %vm364_vm13 = vcmp.ne.s32.totalorder %v747_v24, %v358_v30 }
  0x95   : > { %vm362_vm12 = vmand %vm295_vm8, %vm360_vm9  ;;  %vm917_vm9 = vcmp.ge.s32.totalorder %v749_v25, 1 }
  0x96   : > { %vm366_vm3 = vmand %vm362_vm12, %vm364_vm13 }
  0x97   : > { %vm797_vm7 = vmand %vm366_vm3, %vm916_vm2 }
  0x98   : > { %vm803_vm12 = vmand %vm307_vm5, %vm917_vm9 }
  0x99   : > { %v925_v41 = vsel %vm803_vm12, 4294967295, %v924_v41 }
  0x9b   : > { %v356_v36 = vpop.permute.xlu2 %355 }
  0x9c   : > { %vm359_vm1 = vcmp.ne.s32.totalorder %v356_v36, 255  ;;  %vm363_vm11 = vcmp.ne.s32.totalorder %v745_v23, %v356_v36 }
  0x9d   : > { %vm361_vm6 = vmand %vm918_vm10, %vm359_vm1  ;;  %vm325_vm1 = vcmp.le.s32.totalorder %v293_v38, 126 }
  0x9e   : > { %vm808_vm15 = vmand %vm361_vm6, %vm363_vm11  ;;  %vm306_vm11 = vcmp.ne.s32.totalorder %v747_v24, %v299_v34 }
  0x9f   : > { %v927_v42 = vsel %vm808_vm15, 4294967295, %v926_v42  ;;  %vm919_vm15 = vcmp.ge.s32.totalorder %v293_v38, 1 }
  0xa8   : > { %v314_v40 = vpop.permute.xlu0 %313 }
  0xa9   : > { %vm317_vm13 = vcmp.ne.s32.totalorder %v314_v40, 255  ;;  %vm321_vm14 = vcmp.ne.s32.totalorder %v745_v23, %v314_v40 }
  0xaa   : > { %vm319_vm0 = vmand %vm918_vm10, %vm317_vm13  ;;  %vm930_vm13 = vcmp.le.s32.totalorder %v776_v35, 14 }
  0xab   : > { %vm323_vm3 = vmand %vm319_vm0, %vm321_vm14  ;;  %v338_v43 = vpop.permute.xlu1 %337 }
  0xac   : > { %vm815_vm2 = vmand %vm323_vm3, %vm325_vm1  ;;  %vm340_vm5 = vcmp.ne.s32.totalorder %v338_v43, 255  ;;  %vm344_vm9 = vcmp.ne.s32.totalorder %v747_v24, %v338_v43 }
  0xad   : > { %v929_v44 = vsel %vm815_vm2, 4294967295, %v928_v44  ;;  %vm342_vm6 = vmand %vm295_vm8, %vm340_vm5 }
  0xae   : > { %vm346_vm12 = vmand %vm342_vm6, %vm344_vm9  ;;  %vm938_vm6 = vnez %v929_v44 }
  0xaf   : > { %vm350_vm10 = vmand %vm346_vm12, %vm930_vm13  ;;  %vm935_vm12 = vnez %v927_v42 }
  0xb0   : > { %v316_v45 = vpop.permute.xlu0 %315  ;;  %vm827_vm14 = vmand %vm787_vm4, %vm306_vm11 }
  0xb1   : > { %v932_v46 = vsel %vm827_vm14, 4294967295, %v931_v46  ;;  %vm318_vm0 = vcmp.ne.s32.totalorder %v316_v45, 255  ;;  %vm322_vm3 = vcmp.ne.s32.totalorder %v747_v24, %v316_v45  ;;  %vm352_vm2 = vmand %vm350_vm10, %vm325_vm1  ;;  %vm939_vm10 = vnez %v925_v41 }
  0xb2   : > { %vm836_vm9 = vmand %vm797_vm7, %vm919_vm15 }
  0xb3   : > { %v934_v47 = vsel %vm836_vm9, 4294967295, %v933_v47  ;;  %vm843_vm5 = vmand %vm935_vm12, %vm919_vm15  ;;  %v336_v49 = vpop.permute.xlu1 %335  ;;  %vm940_vm12 = vcmp.ne.s32.totalorder %v745_v23, 255 }
  0xb4   : > { %v937_v48 = vsel %vm843_vm5, 4294967295, %v936_v48  ;;  %vm320_vm4 = vmand %vm295_vm8, %vm318_vm0  ;;  %vm339_vm9 = vcmp.ne.s32.totalorder %v336_v49, 255  ;;  %vm343_vm14 = vcmp.ne.s32.totalorder %v745_v23, %v336_v49  ;;  %vm941_vm8 = vnez %v932_v46 }
  0xb5   : > { %vm328_vm11 = vmor %vm939_vm10, %vm938_vm6 }
  0xb6   : > { %vm324_vm13 = vmand %vm320_vm4, %vm322_vm3  ;;  %vm942_vm3 = vnez %v934_v47 }
  0xb7   : > { %vm327_vm7 = vmand %vm324_vm13, %vm325_vm1 }
  0xb8   : > { %vm341_vm15 = vmand %vm940_vm12, %vm339_vm9  ;;  %vm943_vm9 = vnez %v937_v48 }
  0xb9   : > { %vm345_vm5 = vmand %vm341_vm15, %vm343_vm14  ;;  %vm946_vm14 = vcmp.lt.s32.totalorder %v749_v25, 1 }
  0xba   : > { %vm351_vm0 = vmand %vm345_vm5, %vm325_vm1 }
  0xbb   : > { %vm329_vm6 = vmor %vm941_vm8, %vm327_vm7  ;;  %vm949_vm7 = vcmp.ge.s32.totalorder %v749_v25, 1  ;;  %vm416_vm8 = vcmp.ne.s32.totalorder %v741_v21, 255 }
  0xbc   : > { %vm354_vm10 = vmor %vm329_vm6, %vm352_vm2  ;;  %vm944_vm2 = vcmp.ge.s32.totalorder %v293_v38, 1  ;;  %vm415_vm6 = vcmp.ne.s32.totalorder %v738_v20, 255 }
  0xbd   : > { %vm373_vm4 = vmor %vm354_vm10, %vm942_vm3  ;;  %vm413_vm10 = vcmp.gt.f32.partialorder %v551_v12, %v411_v13 }
  0xbe   : > { %v375_v51 = vsel %vm373_vm4, 1, %v651_v50  ;;  %vm353_vm13 = vmor %vm328_vm11, %vm351_vm0  ;;  %vm948_vm11 = vcmp.lt.s32.totalorder %v749_v25, 7  ;;  %vm414_vm4 = vcmp.gt.f32.partialorder %v552_v16, %v412_v17 }
  0xbf   : > { %378 = vrot.lane.b32.xlu1 %v375_v51, %s650_s12  ;;  %vm372_vm12 = vmor %vm353_vm13, %vm943_vm9 }
  0xc0   : > { %v374_v52 = vsel %vm372_vm12, 1, %v651_v50  ;;  %vm945_vm15 = vmmov %vm944_vm2 }
  0xc1   : > { %384 = vrot.lane.b32.xlu2 %v374_v52, %s649_s19  ;;  %376 = vrot.lane.b32.xlu0 %v374_v52, %s650_s12  ;;  %vm947_vm5 = vmmov %vm946_vm14 }
  0xc2   : > { %vm951_vm0 = vmmov %vm948_vm11 }
  0xc9   : > { %386 = vrot.lane.b32.xlu0 %v375_v51, %s649_s19 }
 0x11b   : > { %v385_v56 = vpop.permute.xlu2 %384 }
 0x11c   : > { %v388_v59 = vsel %vm325_vm1, %v385_v56, 0 }
 0x131   : > { %v379_v55 = vpop.permute.xlu1 %378 }
 0x132   : > { %v381_v58 = vsel %vm945_vm15, %v379_v55, 0 }
 0x133   : > { %v377_v53 = vpop.permute.xlu0 %376  ;;  %v383_v60 = vor.u32 %v381_v58, %v375_v51 }
 0x134   : > { %v380_v54 = vsel %vm944_vm2, %v377_v53, 0 }
 0x135   : > { %v382_v57 = vor.u32 %v380_v54, %v374_v52 }
 0x137   : > { %v390_v61 = vor.u32 %v388_v59, %v382_v57 }
 0x139   : > { %v392_v1 = vrot.slane %v390_v61, 7  ;;  %v400_v2 = vrot.slane %v390_v61, 1 }
 0x13b   : > { %v387_v62 = vpop.permute.xlu0 %386 }
 0x13c   : > { %v389_v63 = vsel %vm325_vm1, %v387_v62, 0  ;;  %vm950_vm1 = vcmp.le.s32.totalorder %v776_v35, 14 }
 0x13d   : > { %v391_v0 = vor.u32 %v389_v63, %v383_v60 }
 0x13f   : > { %v393_v3 = vrot.slane %v391_v0, 7  ;;  %v401_v4 = vrot.slane %v391_v0, 1 }
 0x141   : > { %v394_v5 = vsel %vm946_vm14, %v392_v1, %v393_v3  ;;  %v395_v6 = vsel %vm947_vm5, %v393_v3, %v392_v1  ;;  %v403_v7 = vsel %vm948_vm11, %v401_v4, %v400_v2  ;;  %v402_v14 = vsel %vm951_vm0, %v400_v2, %v401_v4 }
 0x142   : > { %v399_v8 = vor.u32 %v394_v5, %v391_v0  ;;  %v396_v9 = vsel %vm949_vm7, %v395_v6, 0  ;;  %v405_v10 = vsel %vm950_vm1, %v403_v7, 0  ;;  %vm439_vm14 = vcmask 0  }
 0x143   : > { %v398_v11 = vor.u32 %v396_v9, %v390_v61 }
 0x144   : > { %v407_v15 = vor.u32 %v405_v10, %v399_v8 }
 0x145   : > { %v406_v18 = vor.u32 %v402_v14, %v398_v11 }
 0x146   : > { %vm418_vm3 = vcmp.gt.s32.totalorder %v407_v15, 0 }
 0x147   : > { %vm417_vm13 = vcmp.gt.s32.totalorder %v406_v18, 0  ;;  %vm420_vm9 = vmand %vm416_vm8, %vm418_vm3 }
 0x148   : > { %vm419_vm12 = vmand %vm415_vm6, %vm417_vm13 }
 0x149   : > { %vm421_vm2 = vmand %vm419_vm12, %vm413_vm10 }
 0x14a   : > { %vm422_vm15 = vmand %vm420_vm9, %vm414_vm4  ;;  %v553_v22 = vsel %vm421_vm2, 1.0, %v652_v19 }
 0x14b   : > { %v554_v23 = vsel %vm422_vm15, 1.0, %v652_v19 }
 0x14c   : > { %v427_v24 = vadd.f32 %v554_v23, %v553_v22 }
 0x14e   : > { %428 = vadd.xlane.f32.xlu1 %v427_v24 }
 0x1c1   : > { %v429_v25 = vpop.xlane.xlu1 %428 }
 0x1c2   : > { %v430_v26 = vrot.slane %v429_v25, 4 }
 0x1c4   : > { %v431_v21 = vadd.f32 %v430_v26, %v429_v25 }
 0x1c6   : > { %v432_v27 = vrot.slane %v431_v21, 2 }
 0x1c8   : > { %v433_v28 = vadd.f32 %v432_v27, %v431_v21 }
 0x1ca   : > { %v434_v20 = vrot.slane %v433_v28, 1 }
 0x1cc   : > { %v435_v29 = vadd.f32 %v434_v20, %v433_v28 }
 0x1ce   : > { %559 = vpush %v435_v29 }
 0x1ff   : > { %s560_s21 = spop %559 }
 0x200   : > { %v437_v30 = vstv %s560_s21 }
 0x201   : > { %440 = vst.msk [vmem:[%s237_s11] sm:$0x1] %vm439_vm14, %v437_v30 }
 0x202 PF: > { %s13_s16 = sadd.s32 1, %s645_s16   ;;  %s952_s12 = smov %s637_s14 }
 0x203   : > { %p10_p10 = scmp.ge.s32.totalorder %s13_s16, 6   ;;  %s953_s13 = smov %s641_s15 }
 0x204   : > { %s954_s14 = smov %s957_s17  ;;  %s955_s15 = smov %s961_s18 }
 0x205   :  { %12 = sbr.rel (!%p10_p10) target bundleno = 3 (0x3), region = 82 }

</bundles_post_ra>
